<compile_context>
chip_gen: v6e
topology: v6e:2x2x1
jax: 0.10.0
libtpu: 0.0.40
codegen_flags: <defaults>
</compile_context>

<pallas_src>
import math

import jax
import jax.numpy as jnp
from jax.experimental import pallas as pl
from jax.experimental.pallas import tpu as pltpu


def _flatten_dma_kernel(x_ref, o_ref, sem):
    # x_ref / o_ref are the full arrays left in HBM (memory_space=pl.ANY).
    # One DMA-engine copy, HBM -> HBM; no VMEM staging, no grid, no vector ops.
    cp = pltpu.make_async_copy(x_ref, o_ref, sem)
    cp.start()
    cp.wait()


def flatten_layer(x, num_features):
    """Pallas equivalent of FlattenLayer.forward: x.view(-1, num_features)."""
    total = math.prod(x.shape)
    rows, rem = divmod(total, num_features)
    assert rem == 0, "num_features must divide the total number of elements"

    # Free metadata reshape (contiguous, row-major): all of the actual
    # "flatten" semantics happen here, outside the kernel, so the kernel is a
    # byte-identical copy regardless of num_features / dtype / shape.
    x2 = jnp.reshape(x, (rows, num_features))

    return pl.pallas_call(
        _flatten_dma_kernel,
        out_shape=jax.ShapeDtypeStruct((rows, num_features), x.dtype),
        in_specs=[pl.BlockSpec(memory_space=pl.ANY)],
        out_specs=pl.BlockSpec(memory_space=pl.ANY),
        scratch_shapes=[pltpu.SemaphoreType.DMA(())],
    )(x2)


if __name__ == "__main__":
    # Conv feature map feeding FlattenLayer: batch=2, channels=4, spatial 16x16
    # -> num_features = 4*16*16 = 1024.
    key = jax.random.PRNGKey(0)
    N, C, H, W = 2, 4, 16, 16
    num_features = C * H * W

    x = jax.random.normal(key, (N, C, H, W), dtype=jnp.float32)

    out = jax.block_until_ready(flatten_layer(x, num_features))

    # Correctness check against the plain-JAX reference of x.view(-1, nf).
    ref = jnp.reshape(x, (-1, num_features))
    assert out.shape == (N, num_features), out.shape
    assert out.dtype == x.dtype
    assert bool(jnp.array_equal(out, ref))

    print("KERNEL_OK")
</pallas_src>

<mosaic_0001>
module attributes {stable_mosaic.version = 11 : i64} {
  func.func @_flatten_dma_kernel(%arg0: memref<2x1024xf32, #tpu.memory_space<any>>, %arg1: memref<2x1024xf32, #tpu.memory_space<any>>, %arg2: memref<!tpu.dma_semaphore, #tpu.memory_space<semaphore_mem>>) attributes {dimension_semantics = [], scalar_prefetch = 0 : i64, scratch_operands = 1 : i64, tpu.core_type = #tpu.core_type<tc>} {
    tpu.enqueue_dma source(%arg0 : memref<2x1024xf32, #tpu.memory_space<any>>) target(%arg1 : memref<2x1024xf32, #tpu.memory_space<any>>) target_semaphore(%arg2 : memref<!tpu.dma_semaphore, #tpu.memory_space<semaphore_mem>>)
    tpu.wait_dma2 semaphore(%arg2 : memref<!tpu.dma_semaphore, #tpu.memory_space<semaphore_mem>>) src(%arg0 : memref<2x1024xf32, #tpu.memory_space<any>>) dst(%arg1 : memref<2x1024xf32, #tpu.memory_space<any>>)
    return
  }
}

</mosaic_0001>

<bundles_post_ra>
// kernel: tpu_custom_call.1
= control target key start
LH: loop header
LB: loop body
LE: loop exit
PB: predicated region body
PF: predicated region fallthrough
CT: control target
= control target key end

     0   :  { %s29_s6 = smov [#allocation2]   ;;  %s30_s7 = smov 131072   ;;  %s48_s0 = inlined_call_operand.hbm [shape: f32[2,1024], index: 0, kind: input, shape index: {}]   ;;  %s49_s1 = inlined_call_operand.hbm [shape: f32[2,1024], index: 1, kind: output, shape index: {}]  }
   0x1   :  { %s31_s8 = smov 0  }
   0x2   :  { %12 = dma.general %s48_s0, 256, %s49_s1, %s29_s6, %s30_s7, [#allocation4], %s31_s8, 0  }
   0x3   :  { %27 = dma.done.wait [#allocation2], 256 }
   0x4   :  { %28 = vsyncadd [#allocation2], 4294967040 }
   0x5   :  { %17 = vsyncmov [#allocation2] }
   0x8   :  { %s18_s13 = vpop.sfrf %17 }
   0x9   :  { %p23_p0 = scmp.ne.s32.totalorder %s18_s13, 0 }
   0xb   :  { %22 = shalt.err (%p23_p0)  }

</bundles_post_ra>
